<compile_context>
chip_gen: v6e
topology: v6e:2x2x1
jax: 0.10.0
libtpu: 0.0.40
codegen_flags: <defaults>
</compile_context>

<pallas_src>
import jax
import jax.numpy as jnp
import numpy as np
from jax.experimental import pallas as pl
from jax.experimental.pallas import tpu as pltpu


def _mixed_layer_cond_kernel(arc_ref,   # [B] int32 in SMEM (scalar prefetch; used only by index_maps)
                             x_ref,     # (1, Cin, thw)      bf16  NCHW-native tile, HW on lanes
                             y_ref,     # (1, Ydim, 1)       bf16  conditioning column
                             wc_ref,    # (1, Cout, Cin)     bf16  selected branch conv weight (pre-transposed)
                             wgb_ref,   # (1, 2*Cout, Ydim)  bf16  fused [gain; bias] projection (pre-transposed)
                             o_ref):    # (1, Cout, thw)     f32
    del arc_ref
    cout = o_ref.shape[1]

    x = x_ref[0]        # (Cin, thw)
    yv = y_ref[0]       # (Ydim, 1)
    wc = wc_ref[0]      # (Cout, Cin)
    wgb = wgb_ref[0]    # (2*Cout, Ydim)

    # 1x1 conv in NCHW layout: (Cout, Cin) @ (Cin, thw) -> (Cout, thw) on the MXU.
    conv = jnp.dot(wc, x, preferred_element_type=jnp.float32)

    # Fused gain/bias projection: (2*Cout, Ydim) @ (Ydim, 1) -> (2*Cout, 1).
    gb = jnp.dot(wgb, yv, preferred_element_type=jnp.float32)
    gain = 1.0 + gb[:cout, :]          # (Cout, 1), broadcasts over HW lanes
    bias = gb[cout:, :]                # (Cout, 1)

    # Epilogue in f32; single lane-dense store (thw is a multiple of 128).
    o_ref[0] = (conv * gain + bias).astype(o_ref.dtype)


def _pick_hw_tile(hw, max_tile=2048):
    """Largest lane tile <= max_tile that is a multiple of 128 and divides HW."""
    if hw % 128 != 0:
        return hw                      # must take the full (un-tiled) extent
    t = min(hw, max_tile)
    t -= t % 128
    while hw % t != 0:
        t -= 128
    return t


@jax.jit
def mixed_layer_cond(x_nchw, y, sample_arc, w_conv, w_gain, w_bias):
    B, Cin, H, W = x_nchw.shape
    num_branch, _, Cout = w_conv.shape
    Ydim = y.shape[-1]
    HW = H * W
    thw = _pick_hw_tile(HW)
    n_hw = HW // thw

    # NCHW-native: free reshape, channels on sublanes, HW on the lane axis.
    x_r = x_nchw.reshape(B, Cin, HW).astype(jnp.bfloat16)
    y_c = y.reshape(B, Ydim, 1).astype(jnp.bfloat16)
    wc_t = jnp.transpose(w_conv, (0, 2, 1)).astype(jnp.bfloat16)            # (nb, Cout, Cin)
    wgb_t = jnp.transpose(jnp.concatenate([w_gain, w_bias], axis=-1),       # (nb, Ydim, 2*Cout)
                          (0, 2, 1)).astype(jnp.bfloat16)                   # (nb, 2*Cout, Ydim)

    # Data-dependent block indices have no runtime bounds check on TPU, so clamp.
    arc = jnp.clip(sample_arc.astype(jnp.int32), 0, num_branch - 1)

    out = pl.pallas_call(
        _mixed_layer_cond_kernel,
        out_shape=jax.ShapeDtypeStruct((B, Cout, HW), jnp.float32),
        grid_spec=pltpu.PrefetchScalarGridSpec(
            num_scalar_prefetch=1,
            grid=(B, n_hw),
            in_specs=[
                pl.BlockSpec((1, Cin, thw),       lambda b, h, arc: (b, 0, h)),
                pl.BlockSpec((1, Ydim, 1),        lambda b, h, arc: (b, 0, 0)),
                pl.BlockSpec((1, Cout, Cin),      lambda b, h, arc: (arc[b], 0, 0)),
                pl.BlockSpec((1, 2 * Cout, Ydim), lambda b, h, arc: (arc[b], 0, 0)),
            ],
            out_specs=pl.BlockSpec((1, Cout, thw), lambda b, h, arc: (b, 0, h)),
        ),
        compiler_params=pltpu.CompilerParams(
            dimension_semantics=("parallel", "parallel")),
    )(arc, x_r, y_c, wc_t, wgb_t)

    # (B, Cout, HW) -> NCHW: free reshape, no transpose needed.
    return out.reshape(B, Cout, H, W)


def mixed_layer_cond_reference(x_nchw, y, sample_arc, w_conv, w_gain, w_bias):
    """Pure-JAX replica of the PyTorch forward (onehot * cat(branches) -> sum)."""
    num_branch = w_conv.shape[0]
    onehot = jax.nn.one_hot(sample_arc, num_branch, dtype=jnp.float32)     # (B, nb)
    x_nhwc = jnp.transpose(x_nchw, (0, 2, 3, 1)).astype(jnp.float32)       # (B,H,W,Cin)
    branch_outs = []
    for j in range(num_branch):
        conv = jnp.einsum('bhwc,cd->bhwd', x_nhwc, w_conv[j])
        gain = 1.0 + y @ w_gain[j]
        bias = y @ w_bias[j]
        branch_outs.append(conv * gain[:, None, None, :] + bias[:, None, None, :])
    stacked = jnp.stack(branch_outs, axis=1)                               # (B, nb, H, W, Cout)
    out = (onehot[:, :, None, None, None] * stacked).sum(axis=1)           # (B, H, W, Cout)
    return jnp.transpose(out, (0, 3, 1, 2))                                # NCHW


if __name__ == "__main__":
    # Small shapes consistent with the module.
    B, Cin, Cout, H, W = 2, 4, 8, 16, 16
    num_branch, Ydim = 3, 16

    key = jax.random.PRNGKey(0)
    kx, ky, kwc, kwg, kwb, karc = jax.random.split(key, 6)

    x = jax.random.normal(kx, (B, Cin, H, W), dtype=jnp.float32)      # NCHW like PyTorch
    y = jax.random.normal(ky, (B, Ydim), dtype=jnp.float32)           # conditioning vector
    sample_arc = jax.random.randint(karc, (B,), 0, num_branch)        # per-sample branch choice

    # Deterministic per-branch params (conditional 1x1 conv weight + cond gain/bias proj).
    w_conv = 0.1 * jax.random.normal(kwc, (num_branch, Cin, Cout), dtype=jnp.float32)
    w_gain = 0.1 * jax.random.normal(kwg, (num_branch, Ydim, Cout), dtype=jnp.float32)
    w_bias = 0.1 * jax.random.normal(kwb, (num_branch, Ydim, Cout), dtype=jnp.float32)

    out = mixed_layer_cond(x, y, sample_arc, w_conv, w_gain, w_bias)
    out = jax.block_until_ready(out)

    # Reference on bf16-rounded inputs (kernel casts to bf16 in the wrapper).
    def _rt(a):
        return a.astype(jnp.bfloat16).astype(jnp.float32)
    ref = mixed_layer_cond_reference(_rt(x), _rt(y), sample_arc,
                                     _rt(w_conv), _rt(w_gain), _rt(w_bias))

    np.testing.assert_allclose(np.asarray(out), np.asarray(ref), rtol=1e-3, atol=1e-3)
    assert out.shape == (B, Cout, H, W)

    print("KERNEL_OK")
</pallas_src>

<mosaic_0001>
module attributes {stable_mosaic.version = 11 : i64} {
  func.func @_mixed_layer_cond_kernel(%arg0: i32, %arg1: i32, %arg2: memref<2xi32, #tpu.memory_space<smem>>, %arg3: memref<1x4x256xbf16, #tpu.memory_space<vmem>>, %arg4: memref<1x16x1xbf16, #tpu.memory_space<vmem>>, %arg5: memref<1x8x4xbf16, #tpu.memory_space<vmem>>, %arg6: memref<1x16x16xbf16, #tpu.memory_space<vmem>>, %arg7: memref<1x8x256xf32, #tpu.memory_space<vmem>>) attributes {dimension_semantics = [#tpu.dimension_semantics<parallel>, #tpu.dimension_semantics<parallel>], iteration_bounds = array<i64: 2, 1>, scalar_prefetch = 1 : i64, scratch_operands = 0 : i64, tpu.core_type = #tpu.core_type<tc>, window_params = [{transform_indices = @transform_0, window_bounds = array<i64: 1, 4, 256>}, {transform_indices = @transform_1, window_bounds = array<i64: 1, 16, 1>}, {transform_indices = @transform_2, window_bounds = array<i64: 1, 8, 4>}, {transform_indices = @transform_3, window_bounds = array<i64: 1, 16, 16>}, {transform_indices = @transform_4, window_bounds = array<i64: 1, 8, 256>}]} {
    %c0 = arith.constant 0 : index
    %c0_0 = arith.constant 0 : index
    %c0_1 = arith.constant 0 : index
    %0 = vector.load %arg3[%c0, %c0_0, %c0_1] : memref<1x4x256xbf16, #tpu.memory_space<vmem>>, vector<1x4x256xbf16>
    %1 = vector.shape_cast %0 : vector<1x4x256xbf16> to vector<4x256xbf16>
    %c0_2 = arith.constant 0 : index
    %c0_3 = arith.constant 0 : index
    %c0_4 = arith.constant 0 : index
    %2 = vector.load %arg4[%c0_2, %c0_3, %c0_4] : memref<1x16x1xbf16, #tpu.memory_space<vmem>>, vector<1x16x1xbf16>
    %3 = vector.shape_cast %2 : vector<1x16x1xbf16> to vector<16x1xbf16>
    %c0_5 = arith.constant 0 : index
    %c0_6 = arith.constant 0 : index
    %c0_7 = arith.constant 0 : index
    %4 = vector.load %arg5[%c0_5, %c0_6, %c0_7] : memref<1x8x4xbf16, #tpu.memory_space<vmem>>, vector<1x8x4xbf16>
    %5 = vector.shape_cast %4 : vector<1x8x4xbf16> to vector<8x4xbf16>
    %c0_8 = arith.constant 0 : index
    %c0_9 = arith.constant 0 : index
    %c0_10 = arith.constant 0 : index
    %6 = vector.load %arg6[%c0_8, %c0_9, %c0_10] : memref<1x16x16xbf16, #tpu.memory_space<vmem>>, vector<1x16x16xbf16>
    %7 = vector.shape_cast %6 : vector<1x16x16xbf16> to vector<16x16xbf16>
    %cst = arith.constant dense<0.000000e+00> : vector<8x256xf32>
    %8 = tpu.matmul %5, %1, %cst {dimension_numbers = #tpu.dot_dimension_numbers<[1], [0], [0], [1], [0, 0, 1, 1], [], []>} : vector<8x4xbf16>, vector<4x256xbf16>, vector<8x256xf32> -> vector<8x256xf32>
    %cst_11 = arith.constant dense<0.000000e+00> : vector<16x1xf32>
    %9 = tpu.matmul %7, %3, %cst_11 {dimension_numbers = #tpu.dot_dimension_numbers<[1], [0], [0], [1], [0, 0, 1, 1], [], []>} : vector<16x16xbf16>, vector<16x1xbf16>, vector<16x1xf32> -> vector<16x1xf32>
    %10 = vector.extract_strided_slice %9 {offsets = [0, 0], sizes = [8, 1], strides = [1, 1]} : vector<16x1xf32> to vector<8x1xf32>
    %cst_12 = arith.constant 1.000000e+00 : f32
    %11 = vector.broadcast %cst_12 : f32 to vector<8x1xf32>
    %12 = arith.addf %11, %10 : vector<8x1xf32>
    %13 = vector.extract_strided_slice %9 {offsets = [8, 0], sizes = [8, 1], strides = [1, 1]} : vector<16x1xf32> to vector<8x1xf32>
    %14 = vector.broadcast %12 : vector<8x1xf32> to vector<8x256xf32>
    %15 = arith.mulf %8, %14 : vector<8x256xf32>
    %16 = vector.broadcast %13 : vector<8x1xf32> to vector<8x256xf32>
    %17 = arith.addf %15, %16 : vector<8x256xf32>
    %c0_13 = arith.constant 0 : index
    %c0_14 = arith.constant 0 : index
    %c0_15 = arith.constant 0 : index
    %18 = vector.load %arg7[%c0_13, %c0_14, %c0_15] : memref<1x8x256xf32, #tpu.memory_space<vmem>>, vector<1x8x256xf32>
    %19 = vector.shape_cast %18 : vector<1x8x256xf32> to vector<8x256xf32>
    %20 = vector.shape_cast %17 : vector<8x256xf32> to vector<1x8x256xf32>
    tpu.vector_store %arg7[%c0_13, %c0_14, %c0_15], %20 {strides = array<i32>} : memref<1x8x256xf32, #tpu.memory_space<vmem>>, vector<1x8x256xf32>,
    return
  }
  func.func @transform_0(%arg0: i32, %arg1: i32, %arg2: memref<2xi32, #tpu.memory_space<smem>>) -> (i32, i32, i32) {
    %c0_i32 = arith.constant 0 : i32
    %c0_i32_0 = arith.constant 0 : i32
    return %arg0, %c0_i32, %arg1 : i32, i32, i32
  }
  func.func @transform_1(%arg0: i32, %arg1: i32, %arg2: memref<2xi32, #tpu.memory_space<smem>>) -> (i32, i32, i32) {
    %c0_i32 = arith.constant 0 : i32
    %c0_i32_0 = arith.constant 0 : i32
    %c0_i32_1 = arith.constant 0 : i32
    return %arg0, %c0_i32, %c0_i32_0 : i32, i32, i32
  }
  func.func @transform_2(%arg0: i32, %arg1: i32, %arg2: memref<2xi32, #tpu.memory_space<smem>>) -> (i32, i32, i32) {
    %0 = arith.index_cast %arg0 : i32 to index
    %1 = memref.load %arg2[%0] : memref<2xi32, #tpu.memory_space<smem>>
    %c0_i32 = arith.constant 0 : i32
    %c0_i32_0 = arith.constant 0 : i32
    %c0_i32_1 = arith.constant 0 : i32
    return %1, %c0_i32, %c0_i32_0 : i32, i32, i32
  }
  func.func @transform_3(%arg0: i32, %arg1: i32, %arg2: memref<2xi32, #tpu.memory_space<smem>>) -> (i32, i32, i32) {
    %0 = arith.index_cast %arg0 : i32 to index
    %1 = memref.load %arg2[%0] : memref<2xi32, #tpu.memory_space<smem>>
    %c0_i32 = arith.constant 0 : i32
    %c0_i32_0 = arith.constant 0 : i32
    %c0_i32_1 = arith.constant 0 : i32
    return %1, %c0_i32, %c0_i32_0 : i32, i32, i32
  }
  func.func @transform_4(%arg0: i32, %arg1: i32, %arg2: memref<2xi32, #tpu.memory_space<smem>>) -> (i32, i32, i32) {
    %c0_i32 = arith.constant 0 : i32
    %c0_i32_0 = arith.constant 0 : i32
    return %arg0, %c0_i32, %arg1 : i32, i32, i32
  }
}

</mosaic_0001>

<bundles_post_ra>
// kernel: mixed_layer_cond.1
= control target key start
LH: loop header
LB: loop body
LE: loop exit
PB: predicated region body
PF: predicated region fallthrough
CT: control target
= control target key end

     0   :  { %s766_s0 = inlined_call_operand.vmem [shape: s32[2], index: 0, kind: input, shape index: {}]   ;;  %s767_s1 = inlined_call_operand.vmem [shape: bf16[2,4,256], index: 1, kind: input, shape index: {}]   ;;  %s768_s2 = inlined_call_operand.vmem [shape: bf16[2,16,1], index: 2, kind: input, shape index: {}]   ;;  %s769_s3 = inlined_call_operand.vmem [shape: bf16[3,8,4], index: 3, kind: input, shape index: {}]   ;;  %s770_s4 = inlined_call_operand.vmem [shape: bf16[3,16,16], index: 4, kind: input, shape index: {}]   ;;  %s771_s5 = inlined_call_operand.vmem [shape: f32[2,8,256], index: 5, kind: output, shape index: {}]  }
   0x1   :  { %s10_s20 = sshll.u32 %s766_s0, 4  ;;  %s11_s20 = int_to_ptr.vmem [resolvable:$true] %s10_s20 }
   0x2   :  { %s644_s21 = scalar_lea.vmem %s11_s20, 16  ;;  %p649_p1 = scmp.lt.s32.totalorder %s11_s20, %s11_s20 }
   0x3   :  { %p645_p0 = scmp.ne.s32.totalorder %s11_s20, %s644_s21  ;;  %p650_p2 = scmp.lt.s32.totalorder %s644_s21, %s644_s21 }
   0x5   :  { %p651_p3 = por %p650_p2, %p649_p1 }
   0x7   :  { %p652_p4 = pnand %p651_p3, %p645_p0 }
   0x9   :  { %655 = shalt.err (!%p652_p4)  }
   0xa   :  { %s682_s22 = smov [#allocation3]  }
   0xb   :  { %13 = dma.vmem_to_smem %s11_s20, 16, %s682_s22, [#allocation2] }
   0xc   :  { %668 = dma.done.wait [#allocation2], 16 }
   0xd   :  { %669 = vsyncadd [#allocation2], 4294967280 }
   0xe   :  { %15 = sfence }
   0xf   :  { %s719_s23 = smov 0   ;;  %s721_s24 = smov 0  }
  0x10   :  { %s723_s25 = smov 0  }
  0x11 LB: > { %s33_s0 = sadd.s32 1, %s676_s24  ;;  %p583_p5 = scmp.ge.s32.totalorder %s680_s25, 1  ;;  %s680_s25 = sphi %s723_s25, %s21_s25   ;;  %s676_s24 = sphi %s721_s24, %s773_s24   ;;  %s672_s23 = sphi %s719_s23, %s772_s23  }
  0x12   : > { %p35_p6 = scmp.ge.s32.totalorder %s33_s0, 2  ;;  %p227_p7 = scmp.lt.s32.totalorder %s680_s25, 3 }
  0x14   : > { %s775_s0 = smov (%p35_p6, %s33_s0), 0  ;;  %p228_p8 = pnand %p583_p5, %p227_p7 }
  0x15   : > { %p278_p9 = scmp.lt.s32.totalorder (!%p228_p8), %s672_s23, 1  ;;  %s298_s26 = sld [smem:[#allocation3 + %s672_s23]] (!%p228_p8) }
  0x16   : > { %231 = sbr.rel (%p228_p8) target bundleno = 360 (0x168), region = 36  ;;  %s292_s27 = sld [smem:[#allocation3 + %s672_s23]] (!%p228_p8) }
  0x1b   : > { %v683_v0 = vmov 0.0   ;;  %vm684_vm0 = vmmov 0   ;;  %s777_s23 = smov (!%p278_p9, %s672_s23), 1  ;;  %v685_v1 = vmov 0   ;;  %vm335_vm1 = vcmask 1041408   ;;  %p299_p10 = scmp.lt.s32.totalorder %s298_s26, 2 }
  0x1c   : > { %607 = vmatprep.subr.bf16.mxu1 %v683_v0  ;;  %609 = vmatprep.mubr.msk.bf16.mxu1 %vm684_vm0, %v683_v0  ;;  %s602_s28 = sshll.u32 %s777_s23, 3  ;;  %s601_s29 = sshll.u32 %s777_s23, 2  ;;  %vm394_vm2 = vcmask 130048   ;;  %vm331_vm3 = vcmask 31744  }
  0x1d   : > { %374 = vmatprep.mubr.bf16.mxu0 %v685_v1  ;;  %641 = vset.pattern.permute.xlu0 %v685_v1  ;;  %s291_s7 = scalar_lea.vmem %s768_s2, %s602_s28  ;;  %s285_s10 = scalar_lea.vmem %s767_s1, %s601_s29 }
  0x1e   : > { %v642_v2 = vld [vmem:[%s291_s7] sm:$0xff]   ;;  %p293_p11 = scmp.lt.s32.totalorder %s292_s27, 2  ;;  %s779_s26 = smov (!%p299_p10, %s298_s26), 2 }
  0x1f   : > { %v593_v3 = vld.sshfl [vmem:[%s285_s10] sm:$0x33 pattern:$0x76325410]  ;;  %608 = vmatpush3.bf16.msra.mxu1 %v642_v2  ;;  %s603_s11 = sshll.u32 %s779_s26, 3  ;;  %s604_s19 = sshll.u32 %s777_s23, 4 }
  0x20   : > { %v330_v4 = vcombine.high %v593_v3, %v593_v3  ;;  %v337_v5 = vsel %vm335_vm1, %v593_v3, 0  ;;  %s781_s27 = smov (!%p293_p11, %s292_s27), 2  ;;  %s303_s14 = scalar_lea.vmem %s770_s4, %s603_s11 }
  0x21   : > { %s588_s15 = sshll.u32 %s781_s27, 2  ;;  %v643_v6 = vld [vmem:[%s303_s14] sm:$0xff]   ;;  %s313_s22 = scalar_lea.vmem %s771_s5, %s604_s19 }
  0x22   : > { %594 = vmatprep.subr.msk.bf16.mxu0 %vm335_vm1, %v330_v4  ;;  %s296_s18 = scalar_lea.vmem %s769_s3, %s588_s15  ;;  %610 = vmatmul.mubr.msk.bf16.vlgmr.msra.gmra.mxu1 %vm394_vm2, %v643_v6 }
  0x23   : > { %357 = vmatpush1.bf16.msra.mxu0 %v337_v5  ;;  %v319_v7 = vld [vmem:[%s296_s18] sm:$0xf] }
  0x26   : > { %595 = vmatmul.mubr.msk.bf16.vlgmr.msra.gmra.mxu0 %vm331_vm3, %v319_v7 }
  0xe2   : > { %v432_v8 = vpop.f32.mrf.mxu1 }
  0xe3   : > { %v439_v10 = vadd.f32 1.0, %v432_v8 }
  0xe4   : > { %v611_v11 = vpop.f32.mrf.mxu1 }
  0xe5   : > { %442 = vperm.xlu0 %641, %v439_v10  }
  0xe6   : > { %v376_v9 = vpop.f32.mrf.mxu0  ;;  %v435_v13 = vpop.f32.mrf.mxu1 }
  0xe8   : > { %v378_v12 = vpop.f32.mrf.mxu0  ;;  %v612_v15 = vpop.f32.mrf.mxu1 }
  0xe9   : > { %449 = vperm.xlu0 %641, %v435_v13  }
  0xea   : > { %v380_v14 = vpop.f32.mrf.mxu0 }
  0xec   : > { %v381_v16 = vpop.f32.mrf.mxu0 }
 0x160   : > { %v443_v17 = vpop.permute.xlu0 %442 }
 0x161   : > { %v445_v18 = vmul.f32 %v443_v17, %v376_v9  ;;  %v446_v19 = vmul.f32 %v443_v17, %v378_v12 }
 0x164   : > { %v450_v20 = vpop.permute.xlu0 %449 }
 0x165   : > { %v452_v21 = vadd.f32 %v450_v20, %v445_v18  ;;  %v453_v22 = vadd.f32 %v450_v20, %v446_v19 }
 0x167   : > { %454 = vst [vmem:[%s313_s22] sm:$0xff] %v452_v21  ;;  %455 = vst [vmem:[%s313_s22 + $0x8] sm:$0xff] %v453_v22 }
 0x168 PF: > { %s21_s25 = sadd.s32 1, %s680_s25   ;;  %s772_s23 = smov %s676_s24 }
 0x169   : > { %p18_p12 = scmp.ge.s32.totalorder %s21_s25, 4   ;;  %s773_s24 = smov %s775_s0 }
 0x16b   :  { %20 = sbr.rel (!%p18_p12) target bundleno = 17 (0x11), region = 75 }

</bundles_post_ra>
